<compile_context>
chip_gen: v5e
topology: v5e:2x2
jax: 0.10.0
libtpu: 0.0.40
codegen_flags: <defaults>
</compile_context>

<pallas_src>
from functools import lru_cache, partial

import jax
import jax.numpy as jnp
from jax.experimental import pallas as pl
from jax.experimental.pallas import tpu as pltpu


def _round_up(x, m):
    return (x + m - 1) // m * m


def _pick_div_tile(padded, cap):
    """Largest multiple of 128 that divides `padded` (itself a multiple of 128)
    and does not exceed `cap`."""
    q = padded // 128
    best = 1
    for d in range(1, q + 1):
        if q % d == 0 and d * 128 <= cap:
            best = d
    return best * 128


# ----------------------------------------------------------------------------
# Pallas fused GEMM kernel:  O = act(X @ W + b [+ R])   (bf16 in, f32 out)
# ----------------------------------------------------------------------------
@lru_cache(maxsize=None)
def _get_matmul_fn(Mp, Kp, Np, tm, tk, tn, relu, has_res):
    n_k = Kp // tk

    def _epilogue(y, b_ref, r_ref):
        y = y + b_ref[...]
        if has_res:
            y = y + r_ref[...].astype(jnp.float32)
        if relu:
            y = jnp.maximum(y, 0.0)
        return y

    if n_k == 1:
        # Whole K in one step: no accumulator scratch, write output directly.
        def kernel(*refs):
            if has_res:
                x_ref, w_ref, b_ref, r_ref, o_ref = refs
            else:
                x_ref, w_ref, b_ref, o_ref = refs
                r_ref = None
            y = jnp.dot(x_ref[...], w_ref[...],
                        preferred_element_type=jnp.float32)
            o_ref[...] = _epilogue(y, b_ref, r_ref).astype(o_ref.dtype)

        scratch = []
    else:
        def kernel(*refs):
            if has_res:
                x_ref, w_ref, b_ref, r_ref, o_ref, acc_ref = refs
            else:
                x_ref, w_ref, b_ref, o_ref, acc_ref = refs
                r_ref = None
            k = pl.program_id(2)
            prod = jnp.dot(x_ref[...], w_ref[...],
                           preferred_element_type=jnp.float32)

            @pl.when(k == 0)
            def _():
                acc_ref[...] = prod

            @pl.when(k > 0)
            def _():
                acc_ref[...] = acc_ref[...] + prod

            @pl.when(k == pl.num_programs(2) - 1)
            def _():
                o_ref[...] = _epilogue(acc_ref[...], b_ref,
                                       r_ref).astype(o_ref.dtype)

        scratch = [pltpu.VMEM((tm, tn), jnp.float32)]

    in_specs = [
        pl.BlockSpec((tm, tk), lambda i, j, k: (i, k)),   # X  (bf16)
        pl.BlockSpec((tk, tn), lambda i, j, k: (k, j)),   # W  (bf16)
        pl.BlockSpec((1, tn), lambda i, j, k: (0, j)),    # bias (f32)
    ]
    if has_res:
        in_specs.append(pl.BlockSpec((tm, tn), lambda i, j, k: (i, j)))  # residual (bf16)

    return pl.pallas_call(
        kernel,
        out_shape=jax.ShapeDtypeStruct((Mp, Np), jnp.float32),
        grid_spec=pltpu.PrefetchScalarGridSpec(
            num_scalar_prefetch=0,
            grid=(Mp // tm, Np // tn, n_k),
            in_specs=in_specs,
            out_specs=pl.BlockSpec((tm, tn), lambda i, j, k: (i, j)),
            scratch_shapes=scratch,
        ),
        compiler_params=pltpu.CompilerParams(
            dimension_semantics=("parallel", "parallel", "arbitrary"),
            vmem_limit_bytes=32 * 1024 * 1024),
    )


def _matmul_bias_act(x2, w, b, residual, relu):
    """x2:(M,K) bf16, w:(Kp,Np) bf16 (pre-padded), b:(1,Np) f32,
    residual:(M,N) f32 or None  ->  (Mp, Np) f32."""
    M, K = x2.shape
    Kp, Np = w.shape

    tm = 512 if M >= 512 else _round_up(M, 16)   # 16: native bf16 sublane tile
    Mp = _round_up(M, tm)
    small_m = M <= 128
    tk = _pick_div_tile(Kp, 2048 if small_m else 512)
    # Cap tn at 256 for tiny-M / wide-N GEMMs so the parallel grid has >=2 tiles.
    tn = _pick_div_tile(Np, 256 if (small_m and Np >= 512) else 512)

    if Mp != M or Kp != K:
        x2 = jnp.pad(x2, ((0, Mp - M), (0, Kp - K)))

    args = [x2, w, b]
    has_res = residual is not None
    if has_res:
        r = residual.astype(jnp.bfloat16)
        rM, rN = r.shape
        if Mp != rM or Np != rN:
            r = jnp.pad(r, ((0, Mp - rM), (0, Np - rN)))
        args.append(r)

    fn = _get_matmul_fn(Mp, Kp, Np, tm, tk, tn, bool(relu), has_res)
    return fn(*args)


# ----------------------------------------------------------------------------
# Convolution via im2col + fused GEMM (jitted so pad/cast/concat fuse)
# ----------------------------------------------------------------------------
@partial(jax.jit,
         static_argnames=("kh", "kw", "stride", "padding", "relu", "cout"))
def _conv2d_gemm(x, w, b, residual, *, kh, kw, stride, padding, relu, cout):
    n, h, wd, cin = x.shape
    K = kh * kw * cin
    ho = (h + 2 * padding - kh) // stride + 1
    wo = (wd + 2 * padding - kw) // stride + 1

    xb = x.astype(jnp.bfloat16)
    if padding:
        xb = jnp.pad(xb, ((0, 0), (padding, padding),
                          (padding, padding), (0, 0)))
    if kh == 1 and kw == 1 and stride == 1 and padding == 0:
        pat = xb
    else:
        patches = [xb[:, dy:dy + stride * ho:stride,
                      dx:dx + stride * wo:stride, :]
                   for dy in range(kh) for dx in range(kw)]
        pat = jnp.concatenate(patches, axis=-1)      # (n, ho, wo, kh*kw*cin)

    M = n * ho * wo
    x2 = pat.reshape(M, K)
    r2 = None if residual is None else residual.reshape(M, cout)

    out = _matmul_bias_act(x2, w, b, r2, relu)       # (Mp, Np) f32
    out = out[:M, :cout]
    return out.reshape(n, ho, wo, cout)


def conv2d(x, cp, *, stride=1, padding=0, relu=False, residual=None):
    """x: NHWC f32; cp: prepared conv params (pre-folded/padded bf16 weight)."""
    return _conv2d_gemm(x, cp["w"], cp["b"], residual,
                        kh=cp["kh"], kw=cp["kw"], stride=stride,
                        padding=padding, relu=relu, cout=cp["cout"])


# ----------------------------------------------------------------------------
# Pooling / upsampling glue
# ----------------------------------------------------------------------------
def maxpool2x2(x):
    n, h, w, c = x.shape
    return x.reshape(n, h // 2, 2, w // 2, 2, c).max(axis=(2, 4))


@jax.jit
def upsample_bilinear_2x(x):
    """PyTorch F.interpolate(scale_factor=2, mode='bilinear', align_corners=False)."""
    def interp(arr, axis, size_in):
        size_out = 2 * size_in
        dst = jnp.arange(size_out, dtype=jnp.float32)
        src = jnp.clip((dst + 0.5) / 2.0 - 0.5, 0.0, size_in - 1)
        i0 = jnp.floor(src).astype(jnp.int32)
        i1 = jnp.minimum(i0 + 1, size_in - 1)
        frac = src - i0.astype(jnp.float32)
        a0 = jnp.take(arr, i0, axis=axis)
        a1 = jnp.take(arr, i1, axis=axis)
        shape = [1] * arr.ndim
        shape[axis] = size_out
        frac = frac.reshape(shape)
        return a0 * (1.0 - frac) + a1 * frac

    x = interp(x, 1, x.shape[1])
    x = interp(x, 2, x.shape[2])
    return x


# ----------------------------------------------------------------------------
# Parameters (deterministic synthetic init matching module shapes)
# ----------------------------------------------------------------------------
def build_params():
    keys = iter(jax.random.split(jax.random.PRNGKey(1), 2048))
    nk = lambda: next(keys)

    def conv_w(kh, kw, cin, cout):
        fan_in = kh * kw * cin
        return jax.random.normal(nk(), (kh, kw, cin, cout),
                                 jnp.float32) * (2.0 / fan_in) ** 0.5

    def conv_b(c):
        return 0.01 * jax.random.normal(nk(), (c,), jnp.float32)

    def bn(c):
        return dict(gamma=1.0 + 0.1 * jax.random.normal(nk(), (c,), jnp.float32),
                    beta=0.1 * jax.random.normal(nk(), (c,), jnp.float32),
                    mean=0.1 * jax.random.normal(nk(), (c,), jnp.float32),
                    var=1.0 + 0.1 * jnp.abs(jax.random.normal(nk(), (c,), jnp.float32)))

    def basic_block(cin, cout, stride):
        p = dict(conv1_w=conv_w(3, 3, cin, cout), bn1=bn(cout),
                 conv2_w=conv_w(3, 3, cout, cout), bn2=bn(cout), stride=stride)
        if stride != 1 or cin != cout:
            p["down_w"] = conv_w(1, 1, cin, cout)
            p["down_bn"] = bn(cout)
        return p

    def layer(cin, cout, n, stride):
        return [basic_block(cin, cout, stride)] + \
               [basic_block(cout, cout, 1) for _ in range(n - 1)]

    def convrelu(cin, cout):
        return dict(w=conv_w(3, 3, cin, cout), b=conv_b(cout))

    def decoder(cin, cmid, cout):
        return dict(cr1=convrelu(cin, cmid), cr2=convrelu(cmid, cout))

    nf = 32
    return dict(
        conv1_w=conv_w(7, 7, 3, 64), bn1=bn(64),
        layer1=layer(64, 64, 3, 1),
        layer2=layer(64, 128, 4, 2),
        layer3=layer(128, 256, 6, 2),
        layer4=layer(256, 512, 3, 2),
        center=decoder(512, nf * 16, nf * 8),
        dec5=decoder(512 + nf * 8, nf * 16, nf * 8),
        dec4=decoder(256 + nf * 8, nf * 16, nf * 8),
        dec3=decoder(128 + nf * 8, nf * 8, nf * 2),
        dec2=decoder(64 + nf * 2, nf * 4, nf * 4),
        dec1=decoder(nf * 4, nf * 4, nf),
        dec0=convrelu(nf, nf),
        final_w=conv_w(1, 1, nf, 1), final_b=conv_b(1),
    )


def fold_bn(w, b, bn, eps=1e-5):
    """Fold eval-mode BatchNorm into conv weight/bias."""
    s = bn["gamma"] / jnp.sqrt(bn["var"] + eps)
    w2 = w * s
    b0 = jnp.zeros((w.shape[-1],), jnp.float32) if b is None else b
    b2 = (b0 - bn["mean"]) * s + bn["beta"]
    return w2, b2


def prepare_params(p):
    """One-time inference prep: fold BN, reshape to (K, Cout), pad K/N to 128
    multiples, cast weights to bf16. Bias stays f32 (added in f32 epilogue)."""
    def prep(w, b=None, bn=None):
        if bn is not None:
            w, b = fold_bn(w, b, bn)
        kh, kw, cin, cout = w.shape
        K = kh * kw * cin
        Kp, Np = _round_up(K, 128), _round_up(cout, 128)
        w2 = jnp.pad(w.reshape(K, cout).astype(jnp.float32),
                     ((0, Kp - K), (0, Np - cout))).astype(jnp.bfloat16)
        if b is None:
            b = jnp.zeros((cout,), jnp.float32)
        b2 = jnp.pad(b.astype(jnp.float32), (0, Np - cout)).reshape(1, Np)
        return dict(w=w2, b=b2, kh=kh, kw=kw, cout=cout)

    def prep_block(bp):
        out = dict(conv1=prep(bp["conv1_w"], None, bp["bn1"]),
                   conv2=prep(bp["conv2_w"], None, bp["bn2"]),
                   stride=bp["stride"])
        if "down_w" in bp:
            out["down"] = prep(bp["down_w"], None, bp["down_bn"])
        return out

    def prep_layer(blocks):
        return [prep_block(b) for b in blocks]

    def prep_cr(cr):
        return prep(cr["w"], cr["b"])

    def prep_dec(d):
        return dict(cr1=prep_cr(d["cr1"]), cr2=prep_cr(d["cr2"]))

    return dict(
        conv1=prep(p["conv1_w"], None, p["bn1"]),
        layer1=prep_layer(p["layer1"]), layer2=prep_layer(p["layer2"]),
        layer3=prep_layer(p["layer3"]), layer4=prep_layer(p["layer4"]),
        center=prep_dec(p["center"]), dec5=prep_dec(p["dec5"]),
        dec4=prep_dec(p["dec4"]), dec3=prep_dec(p["dec3"]),
        dec2=prep_dec(p["dec2"]), dec1=prep_dec(p["dec1"]),
        dec0=prep_cr(p["dec0"]),
        final=prep(p["final_w"], p["final_b"]),
    )


# ----------------------------------------------------------------------------
# Forward pass
# ----------------------------------------------------------------------------
def apply_basic_block(x, bp):
    stride = bp["stride"]
    out = conv2d(x, bp["conv1"], stride=stride, padding=1, relu=True)
    if "down" in bp:
        identity = conv2d(x, bp["down"], stride=stride, padding=0, relu=False)
    else:
        identity = x
    # residual add + ReLU fused into the Pallas GEMM epilogue
    return conv2d(out, bp["conv2"], stride=1, padding=1, relu=True,
                  residual=identity)


def apply_layer(x, blocks):
    for bp in blocks:
        x = apply_basic_block(x, bp)
    return x


def apply_convrelu(x, cp):
    return conv2d(x, cp, stride=1, padding=1, relu=True)


def apply_decoder(x, dp):
    x = upsample_bilinear_2x(x)          # Interpolate(scale_factor=2, bilinear)
    x = apply_convrelu(x, dp["cr1"])
    x = apply_convrelu(x, dp["cr2"])
    return x


def unet_forward(x_nchw, params):
    x = jnp.transpose(x_nchw, (0, 2, 3, 1))          # NCHW -> NHWC

    c1 = conv2d(x, params["conv1"], stride=2, padding=3, relu=True)
    c1 = maxpool2x2(c1)                              # self.conv1 (MaxPool2d(2,2))

    c2 = apply_layer(c1, params["layer1"])           # self.conv2
    c3 = apply_layer(c2, params["layer2"])           # self.conv3
    c4 = apply_layer(c3, params["layer3"])           # self.conv4
    c5 = apply_layer(c4, params["layer4"])           # self.conv5

    center = apply_decoder(maxpool2x2(c5), params["center"])
    d5 = apply_decoder(jnp.concatenate([center, c5], axis=-1), params["dec5"])
    d4 = apply_decoder(jnp.concatenate([d5, c4], axis=-1), params["dec4"])
    d3 = apply_decoder(jnp.concatenate([d4, c3], axis=-1), params["dec3"])
    d2 = apply_decoder(jnp.concatenate([d3, c2], axis=-1), params["dec2"])
    d1 = apply_decoder(d2, params["dec1"])
    d0 = apply_convrelu(d1, params["dec0"])

    out = conv2d(d0, params["final"], stride=1, padding=0, relu=False)
    # num_classes == 1 -> no log_softmax (matches PyTorch branch)
    return jnp.transpose(out, (0, 3, 1, 2))          # NHWC -> NCHW


if __name__ == "__main__":
    raw_params = build_params()
    params = prepare_params(raw_params)
    x = jax.random.normal(jax.random.PRNGKey(0), (2, 3, 64, 64), jnp.float32)
    out = unet_forward(x, params)
    out = jax.block_until_ready(out)
    assert out.shape == (2, 1, 64, 64), out.shape
    assert bool(jnp.all(jnp.isfinite(out)))
    print("KERNEL_OK")
</pallas_src>

<mosaic_0001>
module attributes {stable_mosaic.version = 11 : i64} {
  func.func @kernel(%arg0: i32, %arg1: i32, %arg2: i32, %arg3: memref<512x256xbf16, #tpu.memory_space<vmem>>, %arg4: memref<256x128xbf16, #tpu.memory_space<vmem>>, %arg5: memref<1x128xf32, #tpu.memory_space<vmem>>, %arg6: memref<512x128xf32, #tpu.memory_space<vmem>>) attributes {dimension_semantics = [#tpu.dimension_semantics<parallel>, #tpu.dimension_semantics<parallel>, #tpu.dimension_semantics<arbitrary>], iteration_bounds = array<i64: 4, 1, 1>, scalar_prefetch = 0 : i64, scratch_operands = 0 : i64, tpu.core_type = #tpu.core_type<tc>, window_params = [{transform_indices = @transform_0, window_bounds = array<i64: 512, 256>}, {transform_indices = @transform_1, window_bounds = array<i64: 256, 128>}, {transform_indices = @transform_2, window_bounds = array<i64: 1, 128>}, {transform_indices = @transform_3, window_bounds = array<i64: 512, 128>}]} {
    %c0 = arith.constant 0 : index
    %c0_0 = arith.constant 0 : index
    %0 = vector.load %arg3[%c0, %c0_0] : memref<512x256xbf16, #tpu.memory_space<vmem>>, vector<512x256xbf16>
    %c0_1 = arith.constant 0 : index
    %c0_2 = arith.constant 0 : index
    %1 = vector.load %arg4[%c0_1, %c0_2] : memref<256x128xbf16, #tpu.memory_space<vmem>>, vector<256x128xbf16>
    %cst = arith.constant dense<0.000000e+00> : vector<512x128xf32>
    %2 = tpu.matmul %0, %1, %cst {dimension_numbers = #tpu.dot_dimension_numbers<[1], [0], [0], [1], [0, 0, 1, 1], [], []>} : vector<512x256xbf16>, vector<256x128xbf16>, vector<512x128xf32> -> vector<512x128xf32>
    %c0_3 = arith.constant 0 : index
    %c0_4 = arith.constant 0 : index
    %3 = vector.load %arg5[%c0_3, %c0_4] : memref<1x128xf32, #tpu.memory_space<vmem>>, vector<1x128xf32>
    %4 = vector.broadcast %3 : vector<1x128xf32> to vector<512x128xf32>
    %5 = arith.addf %2, %4 : vector<512x128xf32>
    %cst_5 = arith.constant 0.000000e+00 : f32
    %6 = vector.broadcast %cst_5 : f32 to vector<512x128xf32>
    %7 = arith.maximumf %5, %6 : vector<512x128xf32>
    %c0_6 = arith.constant 0 : index
    %c0_7 = arith.constant 0 : index
    %8 = vector.load %arg6[%c0_6, %c0_7] : memref<512x128xf32, #tpu.memory_space<vmem>>, vector<512x128xf32>
    tpu.vector_store %arg6[%c0_6, %c0_7], %7 {strides = array<i32>} : memref<512x128xf32, #tpu.memory_space<vmem>>, vector<512x128xf32>,
    return
  }
  func.func @transform_0(%arg0: i32, %arg1: i32, %arg2: i32) -> (i32, i32) {
    %c0_i32 = arith.constant 0 : i32
    return %arg0, %arg2 : i32, i32
  }
  func.func @transform_1(%arg0: i32, %arg1: i32, %arg2: i32) -> (i32, i32) {
    %c0_i32 = arith.constant 0 : i32
    return %arg2, %arg1 : i32, i32
  }
  func.func @transform_2(%arg0: i32, %arg1: i32, %arg2: i32) -> (i32, i32) {
    %c0_i32 = arith.constant 0 : i32
    %c0_i32_0 = arith.constant 0 : i32
    return %c0_i32, %arg1 : i32, i32
  }
  func.func @transform_3(%arg0: i32, %arg1: i32, %arg2: i32) -> (i32, i32) {
    %c0_i32 = arith.constant 0 : i32
    return %arg0, %arg1 : i32, i32
  }
}

</mosaic_0001>

<bundles_post_ra>
// kernel: _conv2d_gemm.1
= control target key start
LH: loop header
LB: loop body
LE: loop exit
PB: predicated region body
PF: predicated region fallthrough
CT: control target
= control target key end

     0   :  { %8 = vsyncpa [#allocation3], 0  ;;  %s2380_s0 = inlined_call_operand.vmem [shape: bf16[2048,256], index: 0, kind: input, shape index: {}]   ;;  %s2381_s1 = inlined_call_operand.vmem [shape: bf16[256,128], index: 1, kind: input, shape index: {}]   ;;  %s2382_s2 = inlined_call_operand.vmem [shape: f32[1,128], index: 2, kind: input, shape index: {}]   ;;  %s2383_s3 = inlined_call_operand.hbm [shape: f32[2048,128], index: 3, kind: output, shape index: {}]  }
   0x1   :  { %10 = vsyncpa [#allocation3 + $0x1], 0  ;;  %s1964_s12 = smov 0   ;;  %s1966_s13 = smov 0  }
   0x2   :  { %s1968_s14 = smov 0   ;;  %s1970_s15 = smov 0  }
   0x3   :  { %s1972_s16 = smov 0   ;;  %s1974_s17 = smov 0  }
   0x4 LB: > { %s1369_s18 = sadd.s32 4294967295, %s1940_s17   ;;  %s1370_s19 = sadd.s32 4294967294, %s1940_s17   ;;  %s1940_s17 = sphi %s1974_s17, %s16_s17   ;;  %s1936_s16 = sphi %s1972_s16, %s2390_s16   ;;  %s1932_s15 = sphi %s1970_s15, %s2389_s15   ;;  %s1928_s14 = sphi %s1968_s14, %s2388_s14   ;;  %s1924_s13 = sphi %s1966_s13, %s2387_s13   ;;  %s1920_s12 = sphi %s1964_s12, %s2386_s12  }
   0x5   : > { %s35_s20 = sadd.s32 1, %s1936_s16  ;;  %s126_s21 = sadd.s32 1, %s1928_s14 }
   0x6   : > { %p37_p0 = scmp.ge.s32.totalorder %s35_s20, 4  ;;  %p136_p1 = scmp.ne.s32.totalorder %s1928_s14, %s1924_s13 }
   0x7   : > { %p137_p2 = scmp.eq.s32.totalorder %s1369_s18, 3  ;;  %p142_p3 = scmp.ne.s32.totalorder %s1924_s13, %s1920_s12 }
   0x8   : > { %s2392_s20 = smov (%p37_p0, %s35_s20), 0  ;;  %p143_p5 = scmp.eq.s32.totalorder %s1370_s19, 3 }
   0x9   : > { %p2004_p4 = por %p137_p2, %p136_p1  ;;  %s121_s23 = ssub.s32 %s1936_s16, %s2392_s20 }
   0xa   : > { %p1375_p6 = scmp.ge.s32.totalorder %s1940_s17, 1  ;;  %p124_p7 = scmp.eq.s32.totalorder %s121_s23, 0 }
   0xb   : > { %p2011_p8 = por %p143_p5, %p142_p3  ;;  %p194_p9 = scmp.lt.s32.totalorder %s1940_s17, 5 }
   0xc   : > { %s2017_s25 = scalar_select %p124_p7, %s1928_s14, %s126_s21  }
   0xd   : > { %p195_p10 = pnand %p1375_p6, %p194_p9 }
   0xe   : > { %s1377_s11 = sshll.u32 (!%p195_p10), %s1932_s15, 6  ;;  %s231_s4 = sand.u32 (!%p195_p10), 1, %s1924_s13  }
   0xf   : > { %198 = sbr.rel (%p195_p10) target bundleno = 442 (0x1ba), region = 32  ;;  %p236_p11 = scmp.lt.s32.totalorder (!%p195_p10), %s1377_s11, 255 }
  0x10   : > { %s1376_s5 = sshll.u32 (!%p195_p10), %s231_s4, 9  ;;  %s1242_s21 = scalar_lea.sflag (!%p195_p10), [#allocation3], %s231_s4 }
  0x11   : > { %s2154_s6 = scalar_lea.vmem (!%p195_p10), [#allocation2], %s1376_s5  ;;  %s1882_s29 = scalar_lea.hbm (!%p195_p10), %s2383_s3, 2048 }
  0x14   : > { %v1777_v0 = vld [vmem:[%s2381_s1 + $0x38] sm:$0xff]  ;;  %v1776_v2 = vld [vmem:[%s2381_s1 + $0x30] sm:$0xff]  ;;  %v1775_v4 = vld [vmem:[%s2381_s1 + $0x28] sm:$0xff]  ;;  %s2394_s11 = smov (!%p236_p11, %s1377_s11), 255 }
  0x15   : > { %v1785_v1 = vld [vmem:[%s2381_s1 + $0x78] sm:$0xff]  ;;  %775 = vmatpush.bf16.msra.mxu0 %v1777_v0  ;;  %1787 = vmatpush.bf16.msra.mxu2 %v1777_v0  ;;  %v1784_v3 = vld [vmem:[%s2381_s1 + $0x70] sm:$0xff]  ;;  %v1783_v5 = vld [vmem:[%s2381_s1 + $0x68] sm:$0xff]  ;;  %s1705_s7 = sshll.u32 %s2394_s11, 3 }
  0x16   : > { %944 = vmatpush.bf16.msra.mxu1 %v1785_v1  ;;  %1795 = vmatpush.bf16.msra.mxu3 %v1785_v1  ;;  %v1774_v6 = vld [vmem:[%s2381_s1 + $0x20] sm:$0xff]  ;;  %v1773_v8 = vld [vmem:[%s2381_s1 + $0x18] sm:$0xff]  ;;  %v1772_v10 = vld [vmem:[%s2381_s1 + $0x10] sm:$0xff]  ;;  %s2062_s19 = scalar_lea.vmem %s2380_s0, %s1705_s7  ;;  %s1786_s7 = sshll.u32 %s1932_s15, 9 }
  0x17   : > { %v1782_v7 = vld [vmem:[%s2381_s1 + $0x60] sm:$0xff]  ;;  %v1781_v9 = vld [vmem:[%s2381_s1 + $0x58] sm:$0xff]  ;;  %v1780_v11 = vld [vmem:[%s2381_s1 + $0x50] sm:$0xff]  ;;  %s1254_s10 = scalar_lea.hbm %s2383_s3, %s1786_s7  ;;  %s1255_s15 = sshll.u32 %s2154_s6, 4  ;;  %s1256_s15 = int_to_ptr.vmem [resolvable:$true] %s1255_s15 }
  0x18   : > { %v1771_v12 = vld [vmem:[%s2381_s1 + $0x8] sm:$0xff]  ;;  %v1770_v14 = vld [vmem:[%s2381_s1] sm:$0xff]  ;;  %v1390_v28 = vld [vmem:[%s2062_s19 + $0x10] sm:$0xf]  ;;  %s1257_s11 = sshll.u32 %s1254_s10, 4  ;;  %s1258_s11 = int_to_ptr.hbm [resolvable:$true] %s1257_s11 }
  0x19   : > { %776 = vmatpush.bf16.msra.mxu0 %v1776_v2  ;;  %1788 = vmatpush.bf16.msra.mxu2 %v1776_v2  ;;  %v1779_v13 = vld [vmem:[%s2381_s1 + $0x48] sm:$0xff]  ;;  %v1778_v15 = vld [vmem:[%s2381_s1 + $0x40] sm:$0xff]  ;;  %v1709_v29 = vld [vmem:[%s2062_s19 + $0x14] sm:$0xf0]  ;;  %s1876_s23 = sshra.s32 %s1258_s11, 4  ;;  %s1877_s23 = int_to_ptr.hbm [resolvable:$true] %s1876_s23 }
  0x1a   : > { %945 = vmatpush.bf16.msra.mxu1 %v1784_v3  ;;  %1796 = vmatpush.bf16.msra.mxu3 %v1784_v3  ;;  %v1382_v16 = vld [vmem:[%s2062_s19] sm:$0xf]  ;;  %v1707_v17 = vld [vmem:[%s2062_s19 + $0x4] sm:$0xf0]  ;;  %v1706_v20 = vld [vmem:[%s2062_s19 + $0x4] sm:$0xf]  ;;  %v1391_v36 = vor.u32 %v1709_v29, %v1390_v28  ;;  %p1883_p1 = scmp.lt.s32.totalorder %s1877_s23, %s2383_s3 }
  0x1b   : > { %v1510_v18 = vld [vmem:[%s2062_s19 + $0x100] sm:$0xf]  ;;  %v1739_v19 = vld [vmem:[%s2062_s19 + $0x104] sm:$0xf0]  ;;  %v1384_v21 = vld [vmem:[%s2062_s19 + $0x8] sm:$0xf0]  ;;  %v1383_v24 = vor.u32 %v1707_v17, %v1382_v16 }
  0x1c   : > { %v1738_v22 = vld [vmem:[%s2062_s19 + $0x104] sm:$0xf]  ;;  %v1512_v23 = vld [vmem:[%s2062_s19 + $0x108] sm:$0xf0]  ;;  %v1511_v25 = vor.u32 %v1739_v19, %v1510_v18  ;;  %v1387_v26 = vor.u32 %v1706_v20, %v1384_v21  ;;  %v1518_v30 = vld [vmem:[%s2062_s19 + $0x110] sm:$0xf] }
  0x1d   : > { %777 = vmatpush.bf16.msra.mxu0 %v1775_v4  ;;  %1789 = vmatpush.bf16.msra.mxu2 %v1775_v4  ;;  %v1515_v27 = vor.u32 %v1738_v22, %v1512_v23  ;;  %v1741_v31 = vld [vmem:[%s2062_s19 + $0x114] sm:$0xf0]  ;;  %v1708_v32 = vld [vmem:[%s2062_s19 + $0x14] sm:$0xf]  ;;  %v1392_v33 = vld [vmem:[%s2062_s19 + $0x18] sm:$0xf0] }
  0x1e   : > { %946 = vmatpush.bf16.msra.mxu1 %v1783_v5  ;;  %1797 = vmatpush.bf16.msra.mxu3 %v1783_v5  ;;  %v1740_v34 = vld [vmem:[%s2062_s19 + $0x114] sm:$0xf]  ;;  %v1520_v35 = vld [vmem:[%s2062_s19 + $0x118] sm:$0xf0]  ;;  %v1519_v37 = vor.u32 %v1741_v31, %v1518_v30  ;;  %v1395_v38 = vor.u32 %v1708_v32, %v1392_v33  ;;  %v1398_v40 = vld [vmem:[%s2062_s19 + $0x20] sm:$0xf] }
  0x1f   : > { %v1523_v39 = vor.u32 %v1740_v34, %v1520_v35  ;;  %v1711_v41 = vld [vmem:[%s2062_s19 + $0x24] sm:$0xf0]  ;;  %v1526_v42 = vld [vmem:[%s2062_s19 + $0x120] sm:$0xf]  ;;  %v1710_v44 = vld [vmem:[%s2062_s19 + $0x24] sm:$0xf] }
  0x20   : > { %v1743_v43 = vld [vmem:[%s2062_s19 + $0x124] sm:$0xf0]  ;;  %v1400_v45 = vld [vmem:[%s2062_s19 + $0x28] sm:$0xf0]  ;;  %v1742_v46 = vld [vmem:[%s2062_s19 + $0x124] sm:$0xf]  ;;  %v1399_v48 = vor.u32 %v1711_v41, %v1398_v40 }
  0x21   : > { %778 = vmatpush.bf16.msra.mxu0 %v1774_v6  ;;  %1790 = vmatpush.bf16.msra.mxu2 %v1774_v6  ;;  %v1528_v47 = vld [vmem:[%s2062_s19 + $0x128] sm:$0xf0]  ;;  %v1527_v49 = vor.u32 %v1743_v43, %v1526_v42  ;;  %v1403_v50 = vor.u32 %v1710_v44, %v1400_v45  ;;  %v1406_v52 = vld [vmem:[%s2062_s19 + $0x30] sm:$0xf]  ;;  %v1713_v53 = vld [vmem:[%s2062_s19 + $0x34] sm:$0xf0] }
  0x22   : > { %947 = vmatpush.bf16.msra.mxu1 %v1782_v7  ;;  %1798 = vmatpush.bf16.msra.mxu3 %v1782_v7  ;;  %v1531_v51 = vor.u32 %v1742_v46, %v1528_v47  ;;  %v1534_v54 = vld [vmem:[%s2062_s19 + $0x130] sm:$0xf]  ;;  %v1745_v55 = vld [vmem:[%s2062_s19 + $0x134] sm:$0xf0]  ;;  %v1712_v56 = vld [vmem:[%s2062_s19 + $0x34] sm:$0xf]  ;;  %v1407_v60 = vor.u32 %v1713_v53, %v1406_v52 }
  0x23   : > { %v1408_v57 = vld [vmem:[%s2062_s19 + $0x38] sm:$0xf0]  ;;  %v1744_v58 = vld [vmem:[%s2062_s19 + $0x134] sm:$0xf]  ;;  %v1535_v61 = vor.u32 %v1745_v55, %v1534_v54  ;;  %v1414_v0 = vld [vmem:[%s2062_s19 + $0x40] sm:$0xf] }
  0x24   : > { %v1536_v59 = vld [vmem:[%s2062_s19 + $0x138] sm:$0xf0]  ;;  %v1411_v62 = vor.u32 %v1712_v56, %v1408_v57  ;;  %v1715_v1 = vld [vmem:[%s2062_s19 + $0x44] sm:$0xf0]  ;;  %v1542_v2 = vld [vmem:[%s2062_s19 + $0x140] sm:$0xf] }
  0x25   : > { %779 = vmatpush.bf16.msra.mxu0 %v1773_v8  ;;  %1791 = vmatpush.bf16.msra.mxu2 %v1773_v8  ;;  %v1539_v63 = vor.u32 %v1744_v58, %v1536_v59  ;;  %v1747_v3 = vld [vmem:[%s2062_s19 + $0x144] sm:$0xf0]  ;;  %v1714_v4 = vld [vmem:[%s2062_s19 + $0x44] sm:$0xf]  ;;  %v1416_v5 = vld [vmem:[%s2062_s19 + $0x48] sm:$0xf0]  ;;  %v1415_v8 = vor.u32 %v1715_v1, %v1414_v0 }
  0x26   : > { %948 = vmatpush.bf16.msra.mxu1 %v1781_v9  ;;  %1799 = vmatpush.bf16.msra.mxu3 %v1781_v9  ;;  %v1746_v6 = vld [vmem:[%s2062_s19 + $0x144] sm:$0xf]  ;;  %v1544_v7 = vld [vmem:[%s2062_s19 + $0x148] sm:$0xf0]  ;;  %v1543_v9 = vor.u32 %v1747_v3, %v1542_v2  ;;  %v1716_v16 = vld [vmem:[%s2062_s19 + $0x54] sm:$0xf] }
  0x27   : > { %v1424_v17 = vld [vmem:[%s2062_s19 + $0x58] sm:$0xf0]  ;;  %v1748_v18 = vld [vmem:[%s2062_s19 + $0x154] sm:$0xf]  ;;  %v1718_v28 = vld [vmem:[%s2062_s19 + $0x64] sm:$0xf] }
  0x28   : > { %v1552_v19 = vld [vmem:[%s2062_s19 + $0x158] sm:$0xf0]  ;;  %v1427_v22 = vor.u32 %v1716_v16, %v1424_v17  ;;  %v1432_v29 = vld [vmem:[%s2062_s19 + $0x68] sm:$0xf0]  ;;  %v1750_v30 = vld [vmem:[%s2062_s19 + $0x164] sm:$0xf] }
  0x29   : > { %780 = vmatpush.bf16.msra.mxu0 %v1772_v10  ;;  %1792 = vmatpush.bf16.msra.mxu2 %v1772_v10  ;;  %v1419_v10 = vor.u32 %v1714_v4, %v1416_v5  ;;  %v1555_v23 = vor.u32 %v1748_v18, %v1552_v19  ;;  %v1560_v31 = vld [vmem:[%s2062_s19 + $0x168] sm:$0xf0]  ;;  %v1435_v34 = vor.u32 %v1718_v28, %v1432_v29  ;;  %v1720_v40 = vld [vmem:[%s2062_s19 + $0x74] sm:$0xf]  ;;  %v1440_v41 = vld [vmem:[%s2062_s19 + $0x78] sm:$0xf0] }
  0x2a   : > { %949 = vmatpush.bf16.msra.mxu1 %v1780_v11  ;;  %1800 = vmatpush.bf16.msra.mxu3 %v1780_v11  ;;  %v1547_v11 = vor.u32 %v1746_v6, %v1544_v7  ;;  %v1563_v35 = vor.u32 %v1750_v30, %v1560_v31  ;;  %v1752_v42 = vld [vmem:[%s2062_s19 + $0x174] sm:$0xf]  ;;  %v1568_v43 = vld [vmem:[%s2062_s19 + $0x178] sm:$0xf0]  ;;  %v1443_v46 = vor.u32 %v1720_v40, %v1440_v41  ;;  %v1755_v52 = vld [vmem:[%s2062_s19 + $0x184] sm:$0xf0] }
  0x2b   : > { %v1571_v47 = vor.u32 %v1752_v42, %v1568_v43  ;;  %v1722_v53 = vld [vmem:[%s2062_s19 + $0x84] sm:$0xf]  ;;  %v1448_v54 = vld [vmem:[%s2062_s19 + $0x88] sm:$0xf0]  ;;  %v1456_v16 = vld [vmem:[%s2062_s19 + $0x98] sm:$0xf0] }
  0x2c   : > { %v1754_v55 = vld [vmem:[%s2062_s19 + $0x184] sm:$0xf]  ;;  %v1576_v56 = vld [vmem:[%s2062_s19 + $0x188] sm:$0xf0]  ;;  %v1756_v18 = vld [vmem:[%s2062_s19 + $0x194] sm:$0xf] }
  0x2d   : > { %781 = vmatpush.bf16.msra.mxu0 %v1771_v12  ;;  %1793 = vmatpush.bf16.msra.mxu2 %v1771_v12  ;;  %v1422_v12 = vld [vmem:[%s2062_s19 + $0x50] sm:$0xf]  ;;  %v1584_v19 = vld [vmem:[%s2062_s19 + $0x198] sm:$0xf0]  ;;  %v1462_v41 = vld [vmem:[%s2062_s19 + $0xa0] sm:$0xf] }
  0x2e   : > { %950 = vmatpush.bf16.msra.mxu1 %v1779_v13  ;;  %1801 = vmatpush.bf16.msra.mxu3 %v1779_v13  ;;  %v1717_v13 = vld [vmem:[%s2062_s19 + $0x54] sm:$0xf0]  ;;  %s1878_s26 = scalar_lea.hbm %s1877_s23, 512 }
  0x2f   : > { %v1423_v20 = vor.u32 %v1717_v13, %v1422_v12  ;;  %v1725_v12 = vld [vmem:[%s2062_s19 + $0x94] sm:$0xf0]  ;;  %v1582_v13 = vld [vmem:[%s2062_s19 + $0x190] sm:$0xf]  ;;  %p1879_p12 = scmp.ne.s32.totalorder %s1877_s23, %s1878_s26  ;;  %p1884_p2 = scmp.lt.s32.totalorder %s1882_s29, %s1878_s26 }
  0x31   : > { %782 = vmatpush.bf16.msra.mxu0 %v1770_v14  ;;  %1794 = vmatpush.bf16.msra.mxu2 %v1770_v14  ;;  %v1550_v14 = vld [vmem:[%s2062_s19 + $0x150] sm:$0xf]  ;;  %p1880_p13 = pnand %p1879_p12, %p2004_p4  ;;  %p1885_p3 = por %p1884_p2, %p1883_p1 }
  0x32   : > { %951 = vmatpush.bf16.msra.mxu1 %v1778_v15  ;;  %1802 = vmatpush.bf16.msra.mxu3 %v1778_v15  ;;  %v1749_v15 = vld [vmem:[%s2062_s19 + $0x154] sm:$0xf0] }
  0x33   : > { %v1551_v21 = vor.u32 %v1749_v15, %v1550_v14  ;;  %v1757_v14 = vld [vmem:[%s2062_s19 + $0x194] sm:$0xf0]  ;;  %v1724_v15 = vld [vmem:[%s2062_s19 + $0x94] sm:$0xf]  ;;  %p1881_p0 = pneg %p1880_p13 }
  0x34   : > { %783 = vmatmul.bf16.vlgmr.msra.gmra.mxu0 %v1383_v24  ;;  %863 = vmatmul.bf16.vlgmr.msra.gmra.mxu2 %v1511_v25  ;;  %v1430_v24 = vld [vmem:[%s2062_s19 + $0x60] sm:$0xf]  ;;  %v1719_v25 = vld [vmem:[%s2062_s19 + $0x64] sm:$0xf0] }
  0x35   : > { %952 = vmatmul.bf16.vlgmr.msra.gmra.mxu1 %v1387_v26  ;;  %1032 = vmatmul.bf16.vlgmr.msra.gmra.mxu3 %v1515_v27  ;;  %v1558_v26 = vld [vmem:[%s2062_s19 + $0x160] sm:$0xf]  ;;  %v1751_v27 = vld [vmem:[%s2062_s19 + $0x164] sm:$0xf0]  ;;  %v1431_v32 = vor.u32 %v1719_v25, %v1430_v24  ;;  %v1583_v24 = vor.u32 %v1757_v14, %v1582_v13  ;;  %v1729_v13 = vld [vmem:[%s2062_s19 + $0xb4] sm:$0xf0]  ;;  %p1886_p5 = pnand %p1885_p3, %p1881_p0 }
  0x36   : > { %v1559_v33 = vor.u32 %v1751_v27, %v1558_v26  ;;  %v1459_v26 = vor.u32 %v1724_v15, %v1456_v16  ;;  %v1587_v27 = vor.u32 %v1756_v18, %v1584_v19  ;;  %v1598_v14 = vld [vmem:[%s2062_s19 + $0x1b0] sm:$0xf]  ;;  %v1761_v15 = vld [vmem:[%s2062_s19 + $0x1b4] sm:$0xf0]  ;;  %v1728_v16 = vld [vmem:[%s2062_s19 + $0xb4] sm:$0xf] }
  0x37   : > { %v1760_v19 = vld [vmem:[%s2062_s19 + $0x1b4] sm:$0xf] }
  0x44   : > { %788 = vmatmul.bf16.gmra.mxu0 %v1391_v36  ;;  %868 = vmatmul.bf16.gmra.mxu2 %v1519_v37  ;;  %v1438_v36 = vld [vmem:[%s2062_s19 + $0x70] sm:$0xf]  ;;  %v1721_v37 = vld [vmem:[%s2062_s19 + $0x74] sm:$0xf0] }
  0x45   : > { %957 = vmatmul.bf16.gmra.mxu1 %v1395_v38  ;;  %1037 = vmatmul.bf16.gmra.mxu3 %v1523_v39  ;;  %v1566_v38 = vld [vmem:[%s2062_s19 + $0x170] sm:$0xf]  ;;  %v1753_v39 = vld [vmem:[%s2062_s19 + $0x174] sm:$0xf0]  ;;  %v1439_v44 = vor.u32 %v1721_v37, %v1438_v36 }
  0x46   : > { %v1567_v45 = vor.u32 %v1753_v39, %v1566_v38 }
  0x54   : > { %793 = vmatmul.bf16.gmra.mxu0 %v1399_v48  ;;  %873 = vmatmul.bf16.gmra.mxu2 %v1527_v49  ;;  %v2140_v48 = vld [vmem:[%s2382_s2] ss:$0 sm:$0xff] }
  0x55   : > { %962 = vmatmul.bf16.gmra.mxu1 %v1403_v50  ;;  %1042 = vmatmul.bf16.gmra.mxu3 %v1531_v51  ;;  %v1446_v49 = vld [vmem:[%s2062_s19 + $0x80] sm:$0xf]  ;;  %v1723_v50 = vld [vmem:[%s2062_s19 + $0x84] sm:$0xf0] }
  0x56   : > { %v1574_v51 = vld [vmem:[%s2062_s19 + $0x180] sm:$0xf]  ;;  %v1447_v57 = vor.u32 %v1723_v50, %v1446_v49  ;;  %v1464_v49 = vld [vmem:[%s2062_s19 + $0xa8] sm:$0xf0] }
  0x57   : > { %v1575_v58 = vor.u32 %v1755_v52, %v1574_v51  ;;  %v1758_v51 = vld [vmem:[%s2062_s19 + $0x1a4] sm:$0xf]  ;;  %v1592_v52 = vld [vmem:[%s2062_s19 + $0x1a8] sm:$0xf0] }
  0x64   : > { %798 = vmatmul.bf16.gmra.mxu0 %v1407_v60  ;;  %878 = vmatmul.bf16.gmra.mxu2 %v1535_v61  ;;  %v1451_v60 = vor.u32 %v1722_v53, %v1448_v54  ;;  %v1579_v61 = vor.u32 %v1754_v55, %v1576_v56 }
  0x65   : > { %967 = vmatmul.bf16.gmra.mxu1 %v1411_v62  ;;  %1047 = vmatmul.bf16.gmra.mxu3 %v1539_v63 }
  0x74   : > { %803 = vmatmul.bf16.gmra.mxu0 %v1415_v8  ;;  %883 = vmatmul.bf16.gmra.mxu2 %v1543_v9  ;;  %v1454_v9 = vld [vmem:[%s2062_s19 + $0x90] sm:$0xf] }
  0x75   : > { %972 = vmatmul.bf16.gmra.mxu1 %v1419_v10  ;;  %1052 = vmatmul.bf16.gmra.mxu3 %v1547_v11 }
  0x84   : > { %808 = vmatmul.bf16.gmra.mxu0 %v1423_v20  ;;  %888 = vmatmul.bf16.gmra.mxu2 %v1551_v21 }
  0x85   : > { %977 = vmatmul.bf16.gmra.mxu1 %v1427_v22  ;;  %1057 = vmatmul.bf16.gmra.mxu3 %v1555_v23  ;;  %v1455_v23 = vor.u32 %v1725_v12, %v1454_v9 }
  0x94   : > { %813 = vmatmul.bf16.gmra.mxu0 %v1431_v32  ;;  %893 = vmatmul.bf16.gmra.mxu2 %v1559_v33 }
  0x95   : > { %982 = vmatmul.bf16.gmra.mxu1 %v1435_v34  ;;  %1062 = vmatmul.bf16.gmra.mxu3 %v1563_v35 }
  0xa4   : > { %818 = vmatmul.bf16.gmra.mxu0 %v1439_v44  ;;  %898 = vmatmul.bf16.gmra.mxu2 %v1567_v45  ;;  %v1727_v44 = vld [vmem:[%s2062_s19 + $0xa4] sm:$0xf0]  ;;  %v1590_v45 = vld [vmem:[%s2062_s19 + $0x1a0] sm:$0xf] }
  0xa5   : > { %987 = vmatmul.bf16.gmra.mxu1 %v1443_v46  ;;  %1067 = vmatmul.bf16.gmra.mxu3 %v1571_v47  ;;  %v1759_v46 = vld [vmem:[%s2062_s19 + $0x1a4] sm:$0xf0]  ;;  %v1726_v47 = vld [vmem:[%s2062_s19 + $0xa4] sm:$0xf]  ;;  %v1463_v56 = vor.u32 %v1727_v44, %v1462_v41 }
  0xb1   : > { %v784_v59 = vpop.f32.mrf.mxu0 }
  0xb2   : > { %v785_v62 = vadd.f32 %v2140_v48, %v784_v59  ;;  %v953_v63 = vpop.f32.mrf.mxu1  ;;  %v1467_v59 = vor.u32 %v1726_v47, %v1464_v49  ;;  %v1763_v47 = vld [vmem:[%s2062_s19 + $0x1c4] sm:$0xf0]  ;;  %v1730_v49 = vld [vmem:[%s2062_s19 + $0xc4] sm:$0xf] }
  0xb4   : > { %v954_v0 = vadd.f32 %v953_v63, %v785_v62  ;;  %823 = vmatmul.bf16.gmra.mxu0 %v1447_v57  ;;  %903 = vmatmul.bf16.gmra.mxu2 %v1575_v58  ;;  %v1591_v57 = vor.u32 %v1759_v46, %v1590_v45  ;;  %v1731_v45 = vld [vmem:[%s2062_s19 + $0xc4] sm:$0xf0]  ;;  %v1606_v46 = vld [vmem:[%s2062_s19 + $0x1c0] sm:$0xf] }
  0xb5   : > { %992 = vmatmul.bf16.gmra.mxu1 %v1451_v60  ;;  %1072 = vmatmul.bf16.gmra.mxu3 %v1579_v61  ;;  %v1595_v60 = vor.u32 %v1758_v51, %v1592_v52  ;;  %v1762_v52 = vld [vmem:[%s2062_s19 + $0x1c4] sm:$0xf] }
  0xb6   : > { %v1113_v1 = vmax.f32 %v954_v0, 0.0 }
  0xb7   : > { %v864_v2 = vpop.f32.mrf.mxu2 }
  0xb8   : > { %1177 = vst [vmem:[%s2154_s6] sm:$0xff] %v1113_v1  ;;  %v865_v3 = vadd.f32 %v2140_v48, %v864_v2  ;;  %v1033_v4 = vpop.f32.mrf.mxu3 }
  0xb9   : > { %v786_v5 = vpop.f32.mrf.mxu0 }
  0xba   : > { %v1034_v6 = vadd.f32 %v1033_v4, %v865_v3  ;;  %v787_v7 = vadd.f32 %v2140_v48, %v786_v5  ;;  %v955_v8 = vpop.f32.mrf.mxu1 }
  0xbc   : > { %v1145_v10 = vmax.f32 %v1034_v6, 0.0  ;;  %v956_v11 = vadd.f32 %v955_v8, %v787_v7 }
  0xbe   : > { %1209 = vst [vmem:[%s2154_s6 + $0x100] sm:$0xff] %v1145_v10  ;;  %v1114_v17 = vmax.f32 %v956_v11, 0.0  ;;  %v1470_v10 = vld [vmem:[%s2062_s19 + $0xb0] sm:$0xf] }
  0xbf   : > { %v866_v20 = vpop.f32.mrf.mxu2 }
  0xc0   : > { %1178 = vst [vmem:[%s2154_s6 + $0x8] sm:$0xff] %v1114_v17  ;;  %v867_v21 = vadd.f32 %v2140_v48, %v866_v20  ;;  %v1035_v22 = vpop.f32.mrf.mxu3  ;;  %v1472_v17 = vld [vmem:[%s2062_s19 + $0xb8] sm:$0xf0] }
  0xc1   : > { %v789_v25 = vpop.f32.mrf.mxu0  ;;  %v1600_v20 = vld [vmem:[%s2062_s19 + $0x1b8] sm:$0xf0] }
  0xc2   : > { %v1036_v28 = vadd.f32 %v1035_v22, %v867_v21  ;;  %v790_v29 = vadd.f32 %v2140_v48, %v789_v25  ;;  %v958_v30 = vpop.f32.mrf.mxu1  ;;  %v1599_v25 = vor.u32 %v1761_v15, %v1598_v14  ;;  %v1733_v14 = vld [vmem:[%s2062_s19 + $0xd4] sm:$0xf0]  ;;  %v1614_v15 = vld [vmem:[%s2062_s19 + $0x1d0] sm:$0xf] }
  0xc4   : > { %v1146_v31 = vmax.f32 %v1036_v28, 0.0  ;;  %v959_v32 = vadd.f32 %v958_v30, %v790_v29  ;;  %828 = vmatmul.bf16.gmra.mxu0 %v1455_v23  ;;  %908 = vmatmul.bf16.gmra.mxu2 %v1583_v24  ;;  %v1471_v24 = vor.u32 %v1729_v13, %v1470_v10  ;;  %v1603_v28 = vor.u32 %v1760_v19, %v1600_v20  ;;  %v1764_v20 = vld [vmem:[%s2062_s19 + $0x1d4] sm:$0xf] }
  0xc5   : > { %997 = vmatmul.bf16.gmra.mxu1 %v1459_v26  ;;  %1077 = vmatmul.bf16.gmra.mxu3 %v1587_v27  ;;  %v1475_v27 = vor.u32 %v1728_v16, %v1472_v17  ;;  %v1765_v16 = vld [vmem:[%s2062_s19 + $0x1d4] sm:$0xf0]  ;;  %v1732_v17 = vld [vmem:[%s2062_s19 + $0xd4] sm:$0xf] }
  0xc6   : > { %1210 = vst [vmem:[%s2154_s6 + $0x108] sm:$0xff] %v1146_v31  ;;  %v1115_v33 = vmax.f32 %v959_v32, 0.0 }
  0xc7   : > { %v869_v34 = vpop.f32.mrf.mxu2 }
  0xc8   : > { %1179 = vst [vmem:[%s2154_s6 + $0x10] sm:$0xff] %v1115_v33  ;;  %v870_v35 = vadd.f32 %v2140_v48, %v869_v34  ;;  %v1038_v36 = vpop.f32.mrf.mxu3 }
  0xc9   : > { %v791_v37 = vpop.f32.mrf.mxu0 }
  0xca   : > { %v1039_v38 = vadd.f32 %v1038_v36, %v870_v35  ;;  %v792_v39 = vadd.f32 %v2140_v48, %v791_v37  ;;  %v960_v40 = vpop.f32.mrf.mxu1 }
  0xcc   : > { %v1147_v42 = vmax.f32 %v1039_v38, 0.0  ;;  %v961_v43 = vadd.f32 %v960_v40, %v792_v39 }
  0xce   : > { %1211 = vst [vmem:[%s2154_s6 + $0x110] sm:$0xff] %v1147_v42  ;;  %v1116_v50 = vmax.f32 %v961_v43, 0.0  ;;  %v1478_v42 = vld [vmem:[%s2062_s19 + $0xc0] sm:$0xf] }
  0xcf   : > { %v871_v53 = vpop.f32.mrf.mxu2 }
  0xd0   : > { %1180 = vst [vmem:[%s2154_s6 + $0x18] sm:$0xff] %v1116_v50  ;;  %v872_v54 = vadd.f32 %v2140_v48, %v871_v53  ;;  %v1040_v55 = vpop.f32.mrf.mxu3  ;;  %v1480_v50 = vld [vmem:[%s2062_s19 + $0xc8] sm:$0xf0] }
  0xd1   : > { %v794_v58 = vpop.f32.mrf.mxu0  ;;  %v1608_v53 = vld [vmem:[%s2062_s19 + $0x1c8] sm:$0xf0] }
  0xd2   : > { %v1041_v61 = vadd.f32 %v1040_v55, %v872_v54  ;;  %v795_v62 = vadd.f32 %v2140_v48, %v794_v58  ;;  %v963_v63 = vpop.f32.mrf.mxu1  ;;  %v1607_v58 = vor.u32 %v1763_v47, %v1606_v46  ;;  %v1735_v46 = vld [vmem:[%s2062_s19 + $0xe4] sm:$0xf0]  ;;  %v1622_v47 = vld [vmem:[%s2062_s19 + $0x1e0] sm:$0xf] }
  0xd4   : > { %v1148_v0 = vmax.f32 %v1041_v61, 0.0  ;;  %v964_v1 = vadd.f32 %v963_v63, %v795_v62  ;;  %833 = vmatmul.bf16.gmra.mxu0 %v1463_v56  ;;  %913 = vmatmul.bf16.gmra.mxu2 %v1591_v57  ;;  %v1479_v57 = vor.u32 %v1731_v45, %v1478_v42  ;;  %v1611_v61 = vor.u32 %v1762_v52, %v1608_v53  ;;  %v1766_v53 = vld [vmem:[%s2062_s19 + $0x1e4] sm:$0xf] }
  0xd5   : > { %1002 = vmatmul.bf16.gmra.mxu1 %v1467_v59  ;;  %1082 = vmatmul.bf16.gmra.mxu3 %v1595_v60  ;;  %v1483_v60 = vor.u32 %v1730_v49, %v1480_v50  ;;  %v1767_v49 = vld [vmem:[%s2062_s19 + $0x1e4] sm:$0xf0]  ;;  %v1734_v50 = vld [vmem:[%s2062_s19 + $0xe4] sm:$0xf] }
  0xd6   : > { %1212 = vst [vmem:[%s2154_s6 + $0x118] sm:$0xff] %v1148_v0  ;;  %v1117_v2 = vmax.f32 %v964_v1, 0.0 }
  0xd7   : > { %v874_v3 = vpop.f32.mrf.mxu2 }
  0xd8   : > { %1181 = vst [vmem:[%s2154_s6 + $0x20] sm:$0xff] %v1117_v2  ;;  %v875_v4 = vadd.f32 %v2140_v48, %v874_v3  ;;  %v1043_v5 = vpop.f32.mrf.mxu3 }
  0xd9   : > { %v796_v6 = vpop.f32.mrf.mxu0 }
  0xda   : > { %v1044_v7 = vadd.f32 %v1043_v5, %v875_v4  ;;  %v797_v8 = vadd.f32 %v2140_v48, %v796_v6  ;;  %v965_v9 = vpop.f32.mrf.mxu1 }
  0xdc   : > { %v1149_v11 = vmax.f32 %v1044_v7, 0.0  ;;  %v966_v12 = vadd.f32 %v965_v9, %v797_v8 }
  0xde   : > { %1213 = vst [vmem:[%s2154_s6 + $0x120] sm:$0xff] %v1149_v11  ;;  %v1118_v18 = vmax.f32 %v966_v12, 0.0  ;;  %v1486_v11 = vld [vmem:[%s2062_s19 + $0xd0] sm:$0xf] }
  0xdf   : > { %v876_v21 = vpop.f32.mrf.mxu2 }
  0xe0   : > { %1182 = vst [vmem:[%s2154_s6 + $0x28] sm:$0xff] %v1118_v18  ;;  %v877_v22 = vadd.f32 %v2140_v48, %v876_v21  ;;  %v1045_v23 = vpop.f32.mrf.mxu3  ;;  %v1488_v18 = vld [vmem:[%s2062_s19 + $0xd8] sm:$0xf0] }
  0xe1   : > { %v799_v26 = vpop.f32.mrf.mxu0  ;;  %v1616_v21 = vld [vmem:[%s2062_s19 + $0x1d8] sm:$0xf0] }
  0xe2   : > { %v1046_v29 = vadd.f32 %v1045_v23, %v877_v22  ;;  %v800_v30 = vadd.f32 %v2140_v48, %v799_v26  ;;  %v968_v31 = vpop.f32.mrf.mxu1  ;;  %v1615_v26 = vor.u32 %v1765_v16, %v1614_v15  ;;  %v1737_v15 = vld [vmem:[%s2062_s19 + $0xf4] sm:$0xf0]  ;;  %v1630_v16 = vld [vmem:[%s2062_s19 + $0x1f0] sm:$0xf] }
  0xe4   : > { %v1150_v32 = vmax.f32 %v1046_v29, 0.0  ;;  %v969_v33 = vadd.f32 %v968_v31, %v800_v30  ;;  %838 = vmatmul.bf16.gmra.mxu0 %v1471_v24  ;;  %918 = vmatmul.bf16.gmra.mxu2 %v1599_v25  ;;  %v1487_v25 = vor.u32 %v1733_v14, %v1486_v11  ;;  %v1619_v29 = vor.u32 %v1764_v20, %v1616_v21  ;;  %v1768_v21 = vld [vmem:[%s2062_s19 + $0x1f4] sm:$0xf] }
  0xe5   : > { %1007 = vmatmul.bf16.gmra.mxu1 %v1475_v27  ;;  %1087 = vmatmul.bf16.gmra.mxu3 %v1603_v28  ;;  %v1491_v28 = vor.u32 %v1732_v17, %v1488_v18  ;;  %v1769_v17 = vld [vmem:[%s2062_s19 + $0x1f4] sm:$0xf0]  ;;  %v1736_v18 = vld [vmem:[%s2062_s19 + $0xf4] sm:$0xf] }
  0xe6   : > { %1214 = vst [vmem:[%s2154_s6 + $0x128] sm:$0xff] %v1150_v32  ;;  %v1119_v34 = vmax.f32 %v969_v33, 0.0 }
  0xe7   : > { %v879_v35 = vpop.f32.mrf.mxu2 }
  0xe8   : > { %1183 = vst [vmem:[%s2154_s6 + $0x30] sm:$0xff] %v1119_v34  ;;  %v880_v36 = vadd.f32 %v2140_v48, %v879_v35  ;;  %v1048_v37 = vpop.f32.mrf.mxu3 }
  0xe9   : > { %v801_v38 = vpop.f32.mrf.mxu0 }
  0xea   : > { %v1049_v39 = vadd.f32 %v1048_v37, %v880_v36  ;;  %v802_v40 = vadd.f32 %v2140_v48, %v801_v38  ;;  %v970_v41 = vpop.f32.mrf.mxu1 }
  0xec   : > { %v1151_v43 = vmax.f32 %v1049_v39, 0.0  ;;  %v971_v44 = vadd.f32 %v970_v41, %v802_v40 }
  0xee   : > { %1215 = vst [vmem:[%s2154_s6 + $0x130] sm:$0xff] %v1151_v43  ;;  %v1120_v51 = vmax.f32 %v971_v44, 0.0  ;;  %v1494_v43 = vld [vmem:[%s2062_s19 + $0xe0] sm:$0xf] }
  0xef   : > { %v881_v54 = vpop.f32.mrf.mxu2 }
  0xf0   : > { %1184 = vst [vmem:[%s2154_s6 + $0x38] sm:$0xff] %v1120_v51  ;;  %v882_v55 = vadd.f32 %v2140_v48, %v881_v54  ;;  %v1050_v56 = vpop.f32.mrf.mxu3  ;;  %v1496_v51 = vld [vmem:[%s2062_s19 + $0xe8] sm:$0xf0] }
  0xf1   : > { %v804_v59 = vpop.f32.mrf.mxu0  ;;  %v1624_v54 = vld [vmem:[%s2062_s19 + $0x1e8] sm:$0xf0] }
  0xf2   : > { %v1051_v62 = vadd.f32 %v1050_v56, %v882_v55  ;;  %v805_v63 = vadd.f32 %v2140_v48, %v804_v59  ;;  %v973_v0 = vpop.f32.mrf.mxu1  ;;  %v1623_v59 = vor.u32 %v1767_v49, %v1622_v47 }
  0xf4   : > { %v1152_v1 = vmax.f32 %v1051_v62, 0.0  ;;  %v974_v2 = vadd.f32 %v973_v0, %v805_v63  ;;  %843 = vmatmul.bf16.gmra.mxu0 %v1479_v57  ;;  %923 = vmatmul.bf16.gmra.mxu2 %v1607_v58  ;;  %v1495_v58 = vor.u32 %v1735_v46, %v1494_v43  ;;  %v1627_v62 = vor.u32 %v1766_v53, %v1624_v54 }
  0xf5   : > { %1012 = vmatmul.bf16.gmra.mxu1 %v1483_v60  ;;  %1092 = vmatmul.bf16.gmra.mxu3 %v1611_v61  ;;  %v1499_v61 = vor.u32 %v1734_v50, %v1496_v51 }
  0xf6   : > { %1216 = vst [vmem:[%s2154_s6 + $0x138] sm:$0xff] %v1152_v1  ;;  %v1121_v3 = vmax.f32 %v974_v2, 0.0 }
  0xf7   : > { %v884_v4 = vpop.f32.mrf.mxu2 }
  0xf8   : > { %1185 = vst [vmem:[%s2154_s6 + $0x40] sm:$0xff] %v1121_v3  ;;  %v885_v5 = vadd.f32 %v2140_v48, %v884_v4  ;;  %v1053_v6 = vpop.f32.mrf.mxu3 }
  0xf9   : > { %v806_v7 = vpop.f32.mrf.mxu0 }
  0xfa   : > { %v1054_v8 = vadd.f32 %v1053_v6, %v885_v5  ;;  %v807_v9 = vadd.f32 %v2140_v48, %v806_v7  ;;  %v975_v10 = vpop.f32.mrf.mxu1 }
  0xfc   : > { %v1153_v12 = vmax.f32 %v1054_v8, 0.0  ;;  %v976_v13 = vadd.f32 %v975_v10, %v807_v9 }
  0xfe   : > { %1217 = vst [vmem:[%s2154_s6 + $0x140] sm:$0xff] %v1153_v12  ;;  %v1122_v19 = vmax.f32 %v976_v13, 0.0  ;;  %v1502_v12 = vld [vmem:[%s2062_s19 + $0xf0] sm:$0xf] }
  0xff   : > { %v886_v22 = vpop.f32.mrf.mxu2 }
 0x100   : > { %1186 = vst [vmem:[%s2154_s6 + $0x48] sm:$0xff] %v1122_v19  ;;  %v887_v23 = vadd.f32 %v2140_v48, %v886_v22  ;;  %v1055_v24 = vpop.f32.mrf.mxu3  ;;  %v1504_v19 = vld [vmem:[%s2062_s19 + $0xf8] sm:$0xf0] }
 0x101   : > { %v809_v27 = vpop.f32.mrf.mxu0  ;;  %v1632_v22 = vld [vmem:[%s2062_s19 + $0x1f8] sm:$0xf0] }
 0x102   : > { %v1056_v30 = vadd.f32 %v1055_v24, %v887_v23  ;;  %v810_v31 = vadd.f32 %v2140_v48, %v809_v27  ;;  %v978_v32 = vpop.f32.mrf.mxu1  ;;  %v1631_v27 = vor.u32 %v1769_v17, %v1630_v16 }
 0x104   : > { %v1154_v33 = vmax.f32 %v1056_v30, 0.0  ;;  %v979_v34 = vadd.f32 %v978_v32, %v810_v31  ;;  %848 = vmatmul.bf16.gmra.mxu0 %v1487_v25  ;;  %928 = vmatmul.bf16.gmra.mxu2 %v1615_v26  ;;  %v1503_v26 = vor.u32 %v1737_v15, %v1502_v12  ;;  %v1635_v30 = vor.u32 %v1768_v21, %v1632_v22 }
 0x105   : > { %1017 = vmatmul.bf16.gmra.mxu1 %v1491_v28  ;;  %1097 = vmatmul.bf16.gmra.mxu3 %v1619_v29  ;;  %v1507_v29 = vor.u32 %v1736_v18, %v1504_v19 }
 0x106   : > { %1218 = vst [vmem:[%s2154_s6 + $0x148] sm:$0xff] %v1154_v33  ;;  %v1123_v35 = vmax.f32 %v979_v34, 0.0 }
 0x107   : > { %v889_v36 = vpop.f32.mrf.mxu2 }
 0x108   : > { %1187 = vst [vmem:[%s2154_s6 + $0x50] sm:$0xff] %v1123_v35  ;;  %v890_v37 = vadd.f32 %v2140_v48, %v889_v36  ;;  %v1058_v38 = vpop.f32.mrf.mxu3 }
 0x109   : > { %v811_v39 = vpop.f32.mrf.mxu0 }
 0x10a   : > { %v1059_v40 = vadd.f32 %v1058_v38, %v890_v37  ;;  %v812_v41 = vadd.f32 %v2140_v48, %v811_v39  ;;  %v980_v42 = vpop.f32.mrf.mxu1 }
 0x10c   : > { %v1155_v44 = vmax.f32 %v1059_v40, 0.0  ;;  %v981_v45 = vadd.f32 %v980_v42, %v812_v41 }
 0x10e   : > { %1219 = vst [vmem:[%s2154_s6 + $0x150] sm:$0xff] %v1155_v44  ;;  %v1124_v52 = vmax.f32 %v981_v45, 0.0 }
 0x10f   : > { %v891_v55 = vpop.f32.mrf.mxu2 }
 0x110   : > { %1188 = vst [vmem:[%s2154_s6 + $0x58] sm:$0xff] %v1124_v52  ;;  %v892_v56 = vadd.f32 %v2140_v48, %v891_v55  ;;  %v1060_v57 = vpop.f32.mrf.mxu3 }
 0x111   : > { %v814_v60 = vpop.f32.mrf.mxu0 }
 0x112   : > { %v1061_v63 = vadd.f32 %v1060_v57, %v892_v56  ;;  %v815_v0 = vadd.f32 %v2140_v48, %v814_v60  ;;  %v983_v1 = vpop.f32.mrf.mxu1 }
 0x114   : > { %v1156_v2 = vmax.f32 %v1061_v63, 0.0  ;;  %v984_v3 = vadd.f32 %v983_v1, %v815_v0  ;;  %853 = vmatmul.bf16.gmra.mxu0 %v1495_v58  ;;  %933 = vmatmul.bf16.gmra.mxu2 %v1623_v59 }
 0x115   : > { %1022 = vmatmul.bf16.gmra.mxu1 %v1499_v61  ;;  %1102 = vmatmul.bf16.gmra.mxu3 %v1627_v62 }
 0x116   : > { %1220 = vst [vmem:[%s2154_s6 + $0x158] sm:$0xff] %v1156_v2  ;;  %v1125_v4 = vmax.f32 %v984_v3, 0.0 }
 0x117   : > { %v894_v5 = vpop.f32.mrf.mxu2 }
 0x118   : > { %1189 = vst [vmem:[%s2154_s6 + $0x60] sm:$0xff] %v1125_v4  ;;  %v895_v6 = vadd.f32 %v2140_v48, %v894_v5  ;;  %v1063_v7 = vpop.f32.mrf.mxu3 }
 0x119   : > { %v816_v8 = vpop.f32.mrf.mxu0 }
 0x11a   : > { %v1064_v9 = vadd.f32 %v1063_v7, %v895_v6  ;;  %v817_v10 = vadd.f32 %v2140_v48, %v816_v8  ;;  %v985_v11 = vpop.f32.mrf.mxu1 }
 0x11c   : > { %v1157_v13 = vmax.f32 %v1064_v9, 0.0  ;;  %v986_v14 = vadd.f32 %v985_v11, %v817_v10 }
 0x11e   : > { %1221 = vst [vmem:[%s2154_s6 + $0x160] sm:$0xff] %v1157_v13  ;;  %v1126_v20 = vmax.f32 %v986_v14, 0.0 }
 0x11f   : > { %v896_v23 = vpop.f32.mrf.mxu2 }
 0x120   : > { %1190 = vst [vmem:[%s2154_s6 + $0x68] sm:$0xff] %v1126_v20  ;;  %v897_v24 = vadd.f32 %v2140_v48, %v896_v23  ;;  %v1065_v25 = vpop.f32.mrf.mxu3 }
 0x121   : > { %v819_v28 = vpop.f32.mrf.mxu0 }
 0x122   : > { %v1066_v31 = vadd.f32 %v1065_v25, %v897_v24  ;;  %v820_v32 = vadd.f32 %v2140_v48, %v819_v28  ;;  %v988_v33 = vpop.f32.mrf.mxu1 }
 0x124   : > { %v1158_v34 = vmax.f32 %v1066_v31, 0.0  ;;  %v989_v35 = vadd.f32 %v988_v33, %v820_v32  ;;  %858 = vmatmul.bf16.gmra.mxu0 %v1503_v26  ;;  %938 = vmatmul.bf16.gmra.mxu2 %v1631_v27 }
 0x125   : > { %1027 = vmatmul.bf16.gmra.mxu1 %v1507_v29  ;;  %1107 = vmatmul.bf16.gmra.mxu3 %v1635_v30 }
 0x126   : > { %1222 = vst [vmem:[%s2154_s6 + $0x168] sm:$0xff] %v1158_v34  ;;  %v1127_v36 = vmax.f32 %v989_v35, 0.0 }
 0x127   : > { %v899_v37 = vpop.f32.mrf.mxu2 }
 0x128   : > { %1191 = vst [vmem:[%s2154_s6 + $0x70] sm:$0xff] %v1127_v36  ;;  %v900_v38 = vadd.f32 %v2140_v48, %v899_v37  ;;  %v1068_v39 = vpop.f32.mrf.mxu3 }
 0x129   : > { %v821_v40 = vpop.f32.mrf.mxu0 }
 0x12a   : > { %v1069_v41 = vadd.f32 %v1068_v39, %v900_v38  ;;  %v822_v42 = vadd.f32 %v2140_v48, %v821_v40  ;;  %v990_v43 = vpop.f32.mrf.mxu1 }
 0x12c   : > { %v1159_v44 = vmax.f32 %v1069_v41, 0.0  ;;  %v991_v45 = vadd.f32 %v990_v43, %v822_v42 }
 0x12e   : > { %1223 = vst [vmem:[%s2154_s6 + $0x170] sm:$0xff] %v1159_v44  ;;  %v1128_v46 = vmax.f32 %v991_v45, 0.0 }
 0x12f   : > { %v901_v47 = vpop.f32.mrf.mxu2 }
 0x130   : > { %1192 = vst [vmem:[%s2154_s6 + $0x78] sm:$0xff] %v1128_v46  ;;  %v902_v49 = vadd.f32 %v2140_v48, %v901_v47  ;;  %v1070_v50 = vpop.f32.mrf.mxu3 }
 0x131   : > { %v824_v51 = vpop.f32.mrf.mxu0 }
 0x132   : > { %v1071_v52 = vadd.f32 %v1070_v50, %v902_v49  ;;  %v825_v53 = vadd.f32 %v2140_v48, %v824_v51  ;;  %v993_v54 = vpop.f32.mrf.mxu1 }
 0x134   : > { %v1160_v55 = vmax.f32 %v1071_v52, 0.0  ;;  %v994_v56 = vadd.f32 %v993_v54, %v825_v53 }
 0x136   : > { %1224 = vst [vmem:[%s2154_s6 + $0x178] sm:$0xff] %v1160_v55  ;;  %v1129_v57 = vmax.f32 %v994_v56, 0.0 }
 0x137   : > { %v904_v58 = vpop.f32.mrf.mxu2 }
 0x138   : > { %1193 = vst [vmem:[%s2154_s6 + $0x80] sm:$0xff] %v1129_v57  ;;  %v905_v59 = vadd.f32 %v2140_v48, %v904_v58  ;;  %v1073_v60 = vpop.f32.mrf.mxu3 }
 0x139   : > { %v826_v61 = vpop.f32.mrf.mxu0 }
 0x13a   : > { %v1074_v62 = vadd.f32 %v1073_v60, %v905_v59  ;;  %v827_v63 = vadd.f32 %v2140_v48, %v826_v61  ;;  %v995_v0 = vpop.f32.mrf.mxu1 }
 0x13c   : > { %v1161_v1 = vmax.f32 %v1074_v62, 0.0  ;;  %v996_v2 = vadd.f32 %v995_v0, %v827_v63 }
 0x13e   : > { %1225 = vst [vmem:[%s2154_s6 + $0x180] sm:$0xff] %v1161_v1  ;;  %v1130_v3 = vmax.f32 %v996_v2, 0.0 }
 0x13f   : > { %v906_v4 = vpop.f32.mrf.mxu2 }
 0x140   : > { %1194 = vst [vmem:[%s2154_s6 + $0x88] sm:$0xff] %v1130_v3  ;;  %v907_v5 = vadd.f32 %v2140_v48, %v906_v4  ;;  %v1075_v6 = vpop.f32.mrf.mxu3 }
 0x141   : > { %v829_v7 = vpop.f32.mrf.mxu0 }
 0x142   : > { %v1076_v8 = vadd.f32 %v1075_v6, %v907_v5  ;;  %v830_v9 = vadd.f32 %v2140_v48, %v829_v7  ;;  %v998_v10 = vpop.f32.mrf.mxu1 }
 0x144   : > { %v1162_v11 = vmax.f32 %v1076_v8, 0.0  ;;  %v999_v12 = vadd.f32 %v998_v10, %v830_v9 }
 0x146   : > { %1226 = vst [vmem:[%s2154_s6 + $0x188] sm:$0xff] %v1162_v11  ;;  %v1131_v13 = vmax.f32 %v999_v12, 0.0 }
 0x147   : > { %v909_v14 = vpop.f32.mrf.mxu2 }
 0x148   : > { %1195 = vst [vmem:[%s2154_s6 + $0x90] sm:$0xff] %v1131_v13  ;;  %v910_v15 = vadd.f32 %v2140_v48, %v909_v14  ;;  %v1078_v16 = vpop.f32.mrf.mxu3 }
 0x149   : > { %v831_v17 = vpop.f32.mrf.mxu0 }
 0x14a   : > { %v1079_v18 = vadd.f32 %v1078_v16, %v910_v15  ;;  %v832_v19 = vadd.f32 %v2140_v48, %v831_v17  ;;  %v1000_v20 = vpop.f32.mrf.mxu1 }
 0x14c   : > { %v1163_v21 = vmax.f32 %v1079_v18, 0.0  ;;  %v1001_v22 = vadd.f32 %v1000_v20, %v832_v19 }
 0x14e   : > { %1227 = vst [vmem:[%s2154_s6 + $0x190] sm:$0xff] %v1163_v21  ;;  %v1132_v23 = vmax.f32 %v1001_v22, 0.0 }
 0x14f   : > { %v911_v24 = vpop.f32.mrf.mxu2 }
 0x150   : > { %1196 = vst [vmem:[%s2154_s6 + $0x98] sm:$0xff] %v1132_v23  ;;  %v912_v25 = vadd.f32 %v2140_v48, %v911_v24  ;;  %v1080_v26 = vpop.f32.mrf.mxu3 }
 0x151   : > { %v834_v27 = vpop.f32.mrf.mxu0 }
 0x152   : > { %v1081_v28 = vadd.f32 %v1080_v26, %v912_v25  ;;  %v835_v29 = vadd.f32 %v2140_v48, %v834_v27  ;;  %v1003_v30 = vpop.f32.mrf.mxu1 }
 0x154   : > { %v1164_v31 = vmax.f32 %v1081_v28, 0.0  ;;  %v1004_v32 = vadd.f32 %v1003_v30, %v835_v29 }
 0x156   : > { %1228 = vst [vmem:[%s2154_s6 + $0x198] sm:$0xff] %v1164_v31  ;;  %v1133_v33 = vmax.f32 %v1004_v32, 0.0 }
 0x157   : > { %v914_v34 = vpop.f32.mrf.mxu2 }
 0x158   : > { %1197 = vst [vmem:[%s2154_s6 + $0xa0] sm:$0xff] %v1133_v33  ;;  %v915_v35 = vadd.f32 %v2140_v48, %v914_v34  ;;  %v1083_v36 = vpop.f32.mrf.mxu3 }
 0x159   : > { %v836_v37 = vpop.f32.mrf.mxu0 }
 0x15a   : > { %v1084_v38 = vadd.f32 %v1083_v36, %v915_v35  ;;  %v837_v39 = vadd.f32 %v2140_v48, %v836_v37  ;;  %v1005_v40 = vpop.f32.mrf.mxu1 }
 0x15c   : > { %v1165_v41 = vmax.f32 %v1084_v38, 0.0  ;;  %v1006_v42 = vadd.f32 %v1005_v40, %v837_v39 }
 0x15e   : > { %1229 = vst [vmem:[%s2154_s6 + $0x1a0] sm:$0xff] %v1165_v41  ;;  %v1134_v43 = vmax.f32 %v1006_v42, 0.0 }
 0x15f   : > { %v916_v44 = vpop.f32.mrf.mxu2 }
 0x160   : > { %1198 = vst [vmem:[%s2154_s6 + $0xa8] sm:$0xff] %v1134_v43  ;;  %v917_v45 = vadd.f32 %v2140_v48, %v916_v44  ;;  %v1085_v46 = vpop.f32.mrf.mxu3 }
 0x161   : > { %v839_v47 = vpop.f32.mrf.mxu0 }
 0x162   : > { %v1086_v49 = vadd.f32 %v1085_v46, %v917_v45  ;;  %v840_v50 = vadd.f32 %v2140_v48, %v839_v47  ;;  %v1008_v51 = vpop.f32.mrf.mxu1 }
 0x164   : > { %v1166_v52 = vmax.f32 %v1086_v49, 0.0  ;;  %v1009_v53 = vadd.f32 %v1008_v51, %v840_v50 }
 0x166   : > { %1230 = vst [vmem:[%s2154_s6 + $0x1a8] sm:$0xff] %v1166_v52  ;;  %v1135_v54 = vmax.f32 %v1009_v53, 0.0 }
 0x167   : > { %v919_v55 = vpop.f32.mrf.mxu2 }
 0x168   : > { %1199 = vst [vmem:[%s2154_s6 + $0xb0] sm:$0xff] %v1135_v54  ;;  %v920_v56 = vadd.f32 %v2140_v48, %v919_v55  ;;  %v1088_v57 = vpop.f32.mrf.mxu3 }
 0x169   : > { %v841_v58 = vpop.f32.mrf.mxu0 }
 0x16a   : > { %v1089_v59 = vadd.f32 %v1088_v57, %v920_v56  ;;  %v842_v60 = vadd.f32 %v2140_v48, %v841_v58  ;;  %v1010_v61 = vpop.f32.mrf.mxu1 }
 0x16c   : > { %v1167_v62 = vmax.f32 %v1089_v59, 0.0  ;;  %v1011_v63 = vadd.f32 %v1010_v61, %v842_v60 }
 0x16e   : > { %1231 = vst [vmem:[%s2154_s6 + $0x1b0] sm:$0xff] %v1167_v62  ;;  %v1136_v0 = vmax.f32 %v1011_v63, 0.0 }
 0x16f   : > { %v921_v1 = vpop.f32.mrf.mxu2 }
 0x170   : > { %1200 = vst [vmem:[%s2154_s6 + $0xb8] sm:$0xff] %v1136_v0  ;;  %v922_v2 = vadd.f32 %v2140_v48, %v921_v1  ;;  %v1090_v3 = vpop.f32.mrf.mxu3 }
 0x171   : > { %v844_v4 = vpop.f32.mrf.mxu0 }
 0x172   : > { %v1091_v5 = vadd.f32 %v1090_v3, %v922_v2  ;;  %v845_v6 = vadd.f32 %v2140_v48, %v844_v4  ;;  %v1013_v7 = vpop.f32.mrf.mxu1 }
 0x174   : > { %v1168_v8 = vmax.f32 %v1091_v5, 0.0  ;;  %v1014_v9 = vadd.f32 %v1013_v7, %v845_v6 }
 0x176   : > { %1232 = vst [vmem:[%s2154_s6 + $0x1b8] sm:$0xff] %v1168_v8  ;;  %v1137_v10 = vmax.f32 %v1014_v9, 0.0 }
 0x177   : > { %v924_v11 = vpop.f32.mrf.mxu2 }
 0x178   : > { %1201 = vst [vmem:[%s2154_s6 + $0xc0] sm:$0xff] %v1137_v10  ;;  %v925_v12 = vadd.f32 %v2140_v48, %v924_v11  ;;  %v1093_v13 = vpop.f32.mrf.mxu3 }
 0x179   : > { %v846_v14 = vpop.f32.mrf.mxu0 }
 0x17a   : > { %v1094_v15 = vadd.f32 %v1093_v13, %v925_v12  ;;  %v847_v16 = vadd.f32 %v2140_v48, %v846_v14  ;;  %v1015_v17 = vpop.f32.mrf.mxu1 }
 0x17c   : > { %v1169_v18 = vmax.f32 %v1094_v15, 0.0  ;;  %v1016_v19 = vadd.f32 %v1015_v17, %v847_v16 }
 0x17e   : > { %1233 = vst [vmem:[%s2154_s6 + $0x1c0] sm:$0xff] %v1169_v18  ;;  %v1138_v20 = vmax.f32 %v1016_v19, 0.0  ;;  %v1861_v19 = vld [vmem:[%s2382_s2] ss:$0 sm:$0xff] }
 0x17f   : > { %v926_v21 = vpop.f32.mrf.mxu2 }
 0x180   : > { %1202 = vst [vmem:[%s2154_s6 + $0xc8] sm:$0xff] %v1138_v20  ;;  %v927_v22 = vadd.f32 %v2140_v48, %v926_v21  ;;  %v1095_v23 = vpop.f32.mrf.mxu3 }
 0x181   : > { %v849_v24 = vpop.f32.mrf.mxu0 }
 0x182   : > { %v1096_v25 = vadd.f32 %v1095_v23, %v927_v22  ;;  %v850_v26 = vadd.f32 %v2140_v48, %v849_v24  ;;  %v1018_v27 = vpop.f32.mrf.mxu1 }
 0x184   : > { %v1170_v28 = vmax.f32 %v1096_v25, 0.0  ;;  %v1019_v29 = vadd.f32 %v1018_v27, %v850_v26 }
 0x186   : > { %1234 = vst [vmem:[%s2154_s6 + $0x1c8] sm:$0xff] %v1170_v28  ;;  %v1139_v30 = vmax.f32 %v1019_v29, 0.0 }
 0x187   : > { %v929_v31 = vpop.f32.mrf.mxu2 }
 0x188   : > { %1203 = vst [vmem:[%s2154_s6 + $0xd0] sm:$0xff] %v1139_v30  ;;  %v930_v32 = vadd.f32 %v2140_v48, %v929_v31  ;;  %v1098_v33 = vpop.f32.mrf.mxu3 }
 0x189   : > { %v851_v34 = vpop.f32.mrf.mxu0 }
 0x18a   : > { %v1099_v35 = vadd.f32 %v1098_v33, %v930_v32  ;;  %v852_v36 = vadd.f32 %v2140_v48, %v851_v34  ;;  %v1020_v37 = vpop.f32.mrf.mxu1 }
 0x18c   : > { %v1171_v38 = vmax.f32 %v1099_v35, 0.0  ;;  %v1021_v39 = vadd.f32 %v1020_v37, %v852_v36 }
 0x18e   : > { %1235 = vst [vmem:[%s2154_s6 + $0x1d0] sm:$0xff] %v1171_v38  ;;  %v1140_v40 = vmax.f32 %v1021_v39, 0.0 }
 0x18f   : > { %v931_v41 = vpop.f32.mrf.mxu2 }
 0x190   : > { %1204 = vst [vmem:[%s2154_s6 + $0xd8] sm:$0xff] %v1140_v40  ;;  %v932_v42 = vadd.f32 %v2140_v48, %v931_v41  ;;  %v1100_v43 = vpop.f32.mrf.mxu3 }
 0x191   : > { %v854_v44 = vpop.f32.mrf.mxu0 }
 0x192   : > { %v1101_v45 = vadd.f32 %v1100_v43, %v932_v42  ;;  %v855_v46 = vadd.f32 %v2140_v48, %v854_v44  ;;  %v1023_v47 = vpop.f32.mrf.mxu1 }
 0x194   : > { %v1172_v49 = vmax.f32 %v1101_v45, 0.0  ;;  %v1024_v50 = vadd.f32 %v1023_v47, %v855_v46 }
 0x196   : > { %1236 = vst [vmem:[%s2154_s6 + $0x1d8] sm:$0xff] %v1172_v49  ;;  %v1141_v51 = vmax.f32 %v1024_v50, 0.0 }
 0x197   : > { %v934_v52 = vpop.f32.mrf.mxu2 }
 0x198   : > { %1205 = vst [vmem:[%s2154_s6 + $0xe0] sm:$0xff] %v1141_v51  ;;  %v935_v53 = vadd.f32 %v2140_v48, %v934_v52  ;;  %v1103_v54 = vpop.f32.mrf.mxu3 }
 0x199   : > { %v856_v55 = vpop.f32.mrf.mxu0 }
 0x19a   : > { %v1104_v56 = vadd.f32 %v1103_v54, %v935_v53  ;;  %v857_v57 = vadd.f32 %v2140_v48, %v856_v55  ;;  %v1025_v58 = vpop.f32.mrf.mxu1 }
 0x19c   : > { %v1173_v59 = vmax.f32 %v1104_v56, 0.0  ;;  %v1026_v60 = vadd.f32 %v1025_v58, %v857_v57 }
 0x19e   : > { %1237 = vst [vmem:[%s2154_s6 + $0x1e0] sm:$0xff] %v1173_v59  ;;  %v1142_v61 = vmax.f32 %v1026_v60, 0.0 }
 0x19f   : > { %v936_v62 = vpop.f32.mrf.mxu2 }
 0x1a0   : > { %1206 = vst [vmem:[%s2154_s6 + $0xe8] sm:$0xff] %v1142_v61  ;;  %v937_v63 = vadd.f32 %v2140_v48, %v936_v62  ;;  %v1105_v0 = vpop.f32.mrf.mxu3 }
 0x1a1   : > { %v859_v1 = vpop.f32.mrf.mxu0 }
 0x1a2   : > { %v1106_v2 = vadd.f32 %v1105_v0, %v937_v63  ;;  %v860_v3 = vadd.f32 %v2140_v48, %v859_v1  ;;  %v1028_v4 = vpop.f32.mrf.mxu1 }
 0x1a4   : > { %v1174_v5 = vmax.f32 %v1106_v2, 0.0  ;;  %v1029_v6 = vadd.f32 %v1028_v4, %v860_v3 }
 0x1a6   : > { %1238 = vst [vmem:[%s2154_s6 + $0x1e8] sm:$0xff] %v1174_v5  ;;  %v1143_v7 = vmax.f32 %v1029_v6, 0.0 }
 0x1a7   : > { %v939_v8 = vpop.f32.mrf.mxu2 }
 0x1a8   : > { %1207 = vst [vmem:[%s2154_s6 + $0xf0] sm:$0xff] %v1143_v7  ;;  %v940_v9 = vadd.f32 %v2140_v48, %v939_v8  ;;  %v1108_v10 = vpop.f32.mrf.mxu3 }
 0x1a9   : > { %v861_v11 = vpop.f32.mrf.mxu0 }
 0x1aa   : > { %v1109_v12 = vadd.f32 %v1108_v10, %v940_v9  ;;  %v862_v13 = vadd.f32 %v2140_v48, %v861_v11  ;;  %v1030_v14 = vpop.f32.mrf.mxu1 }
 0x1ac   : > { %v1175_v15 = vmax.f32 %v1109_v12, 0.0  ;;  %v1031_v16 = vadd.f32 %v1030_v14, %v862_v13 }
 0x1ae   : > { %1239 = vst [vmem:[%s2154_s6 + $0x1f0] sm:$0xff] %v1175_v15  ;;  %v1144_v17 = vmax.f32 %v1031_v16, 0.0 }
 0x1af   : > { %v941_v18 = vpop.f32.mrf.mxu2 }
 0x1b0   : > { %1208 = vst [vmem:[%s2154_s6 + $0xf8] sm:$0xff] %v1144_v17  ;;  %v942_v48 = vadd.f32 %v1861_v19, %v941_v18  ;;  %v1110_v20 = vpop.f32.mrf.mxu3 }
 0x1b2   : > { %v1111_v21 = vadd.f32 %v1110_v20, %v942_v48 }
 0x1b4   : > { %v1176_v22 = vmax.f32 %v1111_v21, 0.0 }
 0x1b6   : > { %1240 = vst [vmem:[%s2154_s6 + $0x1f8] sm:$0xff] %v1176_v22 }
 0x1b7   : > { %1889 = shalt.err (!%p1886_p5)
}
 0x1b8   : > { %s1942_s4 = smov 128   ;;  %s1943_s6 = smov 8  }
 0x1b9   : > { %1803 = dma.vmem_to_hbm [thread:$0]  (%p2004_p4), %s1256_s15, 8192, %s1258_s11, %s1242_s21, %s1942_s4, %s1942_s4, %s1943_s6  }
 0x1ba PF: > { %p1809_p6 = scmp.ge.s32.totalorder %s1940_s17, 2  ;;  %s1272_s7 = sand.u32 1, %s1920_s12  }
 0x1bb   : > { %s1273_s8 = scalar_lea.sflag [#allocation3], %s1272_s7 }
 0x1bc   : > { %p1806_p7 = pnand %p1809_p6, %p2011_p8 }
 0x1be   : > { %p1807_p9 = pneg %p1806_p7 }
 0x1c0   : > { %1915 = dma.done.wait (%p1807_p9), %s1273_s8, 8192  }
 0x1c1   : > { %1917 = vsyncadd (%p1807_p9), %s1273_s8, 4294959104  ;;  %s16_s17 = sadd.s32 1, %s1940_s17   ;;  %s2386_s12 = smov %s1924_s13 }
 0x1c2   : > { %p13_p10 = scmp.ge.s32.totalorder %s16_s17, 6   ;;  %s2387_s13 = smov %s1928_s14 }
 0x1c3   : > { %s2388_s14 = smov %s2017_s25  ;;  %s2389_s15 = smov %s1936_s16 }
 0x1c4   : > { %s2390_s16 = smov %s2392_s20  ;;  %15 = sbr.rel (!%p13_p10) target bundleno = 4 (0x4), region = 73 }
 0x1c9   :  { %1279 = vsyncpa [#allocation3], 1 }
 0x1ca   :  { %1281 = vsyncpa [#allocation3 + $0x1], 1 }

</bundles_post_ra>
